<compile_context>
chip_gen: v6e
topology: v6e:2x2x1
jax: 0.10.0
libtpu: 0.0.40
codegen_flags: <defaults>
</compile_context>

<pallas_src>
import functools

import numpy as np
import jax
import jax.numpy as jnp
from jax.experimental import pallas as pl
from jax.experimental.pallas import tpu as pltpu


# ----------------------------- helpers --------------------------------------

def _divisors(n: int):
    ds = set()
    i = 1
    while i * i <= n:
        if n % i == 0:
            ds.add(i)
            ds.add(n // i)
        i += 1
    return sorted(ds)


def _vmem_capacity_bytes():
    try:
        cap = int(pltpu.get_tpu_info().vmem_capacity_bytes)
        if cap > 0:
            return cap
    except Exception:
        pass
    return 64 * 1024 * 1024          # safe lower bound (v7x per-TC VMEM)


def _pick_group(total_rows, W, f, r_budget_bytes):
    """g = #input rows fused per lane-dense row.  Only the OUTPUT lane width
    g*f*W*f must reach 128; prefer g with (g*f*W*f) % 128 == 0 if cheap."""
    out_lane = f * W * f
    g_needed = max(-(-128 // out_lane), 1)
    divs = _divisors(total_rows)
    in_budget = [d for d in divs
                 if (d * W) * (d * out_lane) * 2 <= r_budget_bytes]   # bf16 R
    if not in_budget:
        return 1
    meets = [d for d in in_budget if d >= g_needed]
    if not meets:
        return in_budget[-1]
    aligned = [d for d in meets if (d * out_lane) % 128 == 0]
    if aligned and aligned[0] <= max(2 * g_needed, 4):
        return aligned[0]            # unmasked lane-dense stores, bounded FLOP growth
    return meets[0]


def _pick_col_block(gW, gK, r_budget_bytes):
    """Full R resident when it fits, else tile gK with 128-aligned column
    slices of R on a second grid axis (large-W fallback)."""
    if gW * gK * 2 <= r_budget_bytes:
        return gK
    cands = [d for d in _divisors(gK)
             if d % 128 == 0 and 2 * gW * d * 2 <= r_budget_bytes]
    if cands:
        return max(cands)
    return gK                        # no aligned divisor: caller re-checks footprint


def _pick_row_block(NR, packing, footprint_fn, budget_bytes):
    """Row tile TR: multiple of the sublane packing, within budget, preferring
    an even grid-step count >= 4 (pipeline steady state / megacore balance)."""
    valid = [d for d in _divisors(NR) if d % packing == 0 or d == NR]
    fit = [d for d in valid if footprint_fn(d) <= budget_bytes]
    cands = fit if fit else [min(valid)]
    steps = lambda d: NR // d
    for pred in (lambda d: steps(d) >= 4 and steps(d) % 2 == 0,
                 lambda d: steps(d) >= 4,
                 lambda d: steps(d) >= 2):
        sel = [d for d in cands if pred(d)]
        if sel:
            return max(sel)
    return max(cands)


def _build_replication_matrix(W, f, g):
    """One-hot bf16 matrix R (g*W, g*f*W*f): R[l*W+w, l*f*W*f+i*W*f+w*f+j]=1."""
    base = (np.eye(W, dtype=np.float32)[:, None, :, None]
            * np.ones((1, f, 1, f), np.float32)).reshape(W, f * W * f)
    R = (np.eye(g, dtype=np.float32)[:, None, :, None]
         * base[None, :, None, :]).reshape(g * W, g * f * W * f)
    return jnp.asarray(R, dtype=jnp.bfloat16)      # 0/1 exact in bf16


# ----------------------------- kernel ---------------------------------------

def _upscale_kernel(x_ref, r_ref, o_ref, *, gain, split_f32):
    x = x_ref[...]                                     # (TR, g*W), input dtype
    if gain != 1.0:
        x = x * jnp.asarray(gain, dtype=x.dtype)       # gain in input dtype (torch parity)
    r = r_ref[...]                                     # (g*W, TK) one-hot bf16
    if split_f32:
        # Bit-exact f32/f16 "pick" in 3 single-pass bf16 matmuls (vs HIGHEST's 6):
        # x == x0 + x1 + x2 exactly, each chunk carries 8 mantissa bits.
        xf = x.astype(jnp.float32)
        x0 = xf.astype(jnp.bfloat16)
        rem = xf - x0.astype(jnp.float32)
        x1 = rem.astype(jnp.bfloat16)
        x2 = (rem - x1.astype(jnp.float32)).astype(jnp.bfloat16)
        y = (jnp.dot(x0, r, preferred_element_type=jnp.float32)
             + jnp.dot(x1, r, preferred_element_type=jnp.float32)
             + jnp.dot(x2, r, preferred_element_type=jnp.float32))
        o_ref[...] = y.astype(o_ref.dtype)
    else:
        # bf16 input: single native MXU pass, no f32 intermediate, no cast.
        o_ref[...] = jnp.dot(x, r, preferred_element_type=o_ref.dtype)


# ----------------------------- wrapper --------------------------------------

def upscale2d_ref(x, factor: int = 2, gain: float = 1):
    """Pure-JAX reference mirroring PyTorch Upscale2d.upscale2d."""
    if gain != 1:
        x = x * gain
    if factor != 1:
        N, C, H, W = x.shape
        x = jnp.broadcast_to(x[:, :, :, None, :, None],
                             (N, C, H, factor, W, factor)
                             ).reshape(N, C, H * factor, W * factor)
    return x


def upscale2d(x, factor: int = 2, gain: float = 1):
    assert x.ndim == 4, "expected NCHW input"
    assert isinstance(factor, int) and factor >= 1
    N, C, H, W = x.shape
    f = factor

    if f == 1:
        # Gain-only path: plain elementwise scale; a matmul would be pointless.
        return x if gain == 1 else x * gain

    if x.dtype not in (jnp.float32, jnp.bfloat16, jnp.float16):
        # TODO(synk): integer / exotic dtypes have no exact MXU pick path
        # (v7x MXU has no int support); fall back to plain XLA broadcast.
        return upscale2d_ref(x, factor=f, gain=gain)

    itemsize = jnp.dtype(x.dtype).itemsize
    split_f32 = x.dtype != jnp.bfloat16        # f32/f16 use the exact 3-pass split

    # Per-generation VMEM plan (128 MiB v5e/v6e, 64 MiB v7x).
    cap = _vmem_capacity_bytes()
    vmem_limit = min(cap * 3 // 4, 96 * 1024 * 1024)
    footprint_budget = vmem_limit * 3 // 4
    r_budget = min(footprint_budget // 4, 8 * 1024 * 1024)

    total_rows = N * C * H
    g = _pick_group(total_rows, W, f, r_budget)
    NR = total_rows // g
    gW = g * W
    gK = g * f * W * f

    TK = _pick_col_block(gW, gK, r_budget)
    ncols = gK // TK
    r_copies = 1 if ncols == 1 else 2          # Buffered(1) resident vs streamed slices

    packing = {4: 8, 2: 16, 1: 32}.get(itemsize, 8)

    def footprint(tr):                          # honest VMEM model
        b = 2 * tr * gW * itemsize              # double-buffered input blocks
        b += 2 * tr * TK * itemsize             # double-buffered output blocks
        b += tr * TK * 4                        # f32 matmul temp
        b += r_copies * gW * TK * 2             # resident / streamed bf16 R
        return b

    TR = _pick_row_block(NR, packing, footprint, footprint_budget)
    nrows = NR // TR

    used = footprint(TR)
    if used > cap * 9 // 10:
        # TODO(synk): even the minimum tile does not fit this generation's
        # VMEM; fall back to plain XLA rather than risk a compile failure.
        return upscale2d_ref(x, factor=f, gain=gain)
    vmem_limit = max(vmem_limit, min(used + (8 << 20), cap))

    R = _build_replication_matrix(W, f, g)
    x2 = x.reshape(NR, gW)                      # free contiguous view

    kernel = functools.partial(_upscale_kernel, gain=float(gain),
                               split_f32=split_f32)

    if ncols == 1:
        grid = (nrows,)
        x_spec = pl.BlockSpec((TR, gW), lambda r: (r, 0))
        try:
            # R is fetched once; single-buffer it to halve its VMEM residency.
            r_spec = pl.BlockSpec((gW, TK), lambda r: (0, 0),
                                  pipeline_mode=pl.Buffered(1))
        except Exception:
            r_spec = pl.BlockSpec((gW, TK), lambda r: (0, 0))
        o_spec = pl.BlockSpec((TR, TK), lambda r: (r, 0))
        dims = ("parallel",)
    else:
        # Large-W fallback: stream 128-aligned column slices of R.
        grid = (nrows, ncols)
        x_spec = pl.BlockSpec((TR, gW), lambda r, c: (r, 0))
        r_spec = pl.BlockSpec((gW, TK), lambda r, c: (0, c))
        o_spec = pl.BlockSpec((TR, TK), lambda r, c: (r, c))
        dims = ("parallel", "arbitrary")

    npass = 3 if split_f32 else 1
    out2 = pl.pallas_call(
        kernel,
        out_shape=jax.ShapeDtypeStruct((NR, gK), x.dtype),
        grid_spec=pltpu.PrefetchScalarGridSpec(
            num_scalar_prefetch=0,
            grid=grid,
            in_specs=[x_spec, r_spec],
            out_specs=o_spec,
        ),
        # NOTE(v7x): "parallel" should shard the row axis across both
        # TensorCores; if a trace shows one core idle, switch to CORE_PARALLEL.
        compiler_params=pltpu.CompilerParams(
            dimension_semantics=dims,
            vmem_limit_bytes=int(vmem_limit),
        ),
        cost_estimate=pl.CostEstimate(
            flops=2 * NR * gW * gK * npass,
            transcendentals=0,
            bytes_accessed=(1 + f * f) * N * C * H * W * itemsize + R.size * 2,
        ),
    )(x2, R)

    # Free reshape: (NR, g*f*W*f) is laid out identically to (N, C, H*f, W*f).
    return out2.reshape(N, C, H * f, W * f)


# ------------------------------- main ----------------------------------------

if __name__ == "__main__":
    key = jax.random.PRNGKey(0)
    N, C, H, W = 2, 4, 16, 16
    factor = 2
    x = jax.random.normal(key, (N, C, H, W), dtype=jnp.float32)

    # f32, gain=1 (exact manual 3-pass pick)
    out = jax.block_until_ready(upscale2d(x, factor=factor, gain=1))
    ref = upscale2d_ref(x, factor=factor, gain=1)
    assert out.shape == (N, C, H * factor, W * factor)
    assert jnp.allclose(out, ref, rtol=1e-6, atol=1e-6), "f32 mismatch vs reference"

    # f32 with gain (gain applied in input dtype, torch parity)
    out_g = jax.block_until_ready(upscale2d(x, factor=factor, gain=2.0))
    ref_g = upscale2d_ref(x, factor=factor, gain=2.0)
    assert jnp.allclose(out_g, ref_g, rtol=1e-6, atol=1e-6), "f32+gain mismatch"

    # bf16 input: single native MXU pass, output written directly in bf16
    xb = x.astype(jnp.bfloat16)
    out_b = jax.block_until_ready(upscale2d(xb, factor=factor, gain=1))
    ref_b = upscale2d_ref(xb, factor=factor, gain=1)
    assert jnp.allclose(out_b.astype(jnp.float32), ref_b.astype(jnp.float32),
                        rtol=1e-2, atol=1e-2), "bf16 mismatch vs reference"

    print("KERNEL_OK")
</pallas_src>

<mosaic_0001>
module attributes {stable_mosaic.version = 11 : i64} {
  func.func @_upscale_kernel(%arg0: i32, %arg1: memref<16x32xf32, #tpu.memory_space<vmem>>, %arg2: memref<32x128xbf16, #tpu.memory_space<vmem>>, %arg3: memref<16x128xf32, #tpu.memory_space<vmem>>) attributes {dimension_semantics = [#tpu.dimension_semantics<parallel>], iteration_bounds = array<i64: 4>, scalar_prefetch = 0 : i64, scratch_operands = 0 : i64, tpu.core_type = #tpu.core_type<tc>, window_params = [{transform_indices = @transform_0, window_bounds = array<i64: 16, 32>}, {pipeline_mode = #tpu.pipeline_mode<synchronous>, transform_indices = @transform_1, window_bounds = array<i64: 32, 128>}, {transform_indices = @transform_2, window_bounds = array<i64: 16, 128>}]} {
    %c0 = arith.constant 0 : index
    %c0_0 = arith.constant 0 : index
    %0 = vector.load %arg1[%c0, %c0_0] : memref<16x32xf32, #tpu.memory_space<vmem>>, vector<16x32xf32>
    %c0_1 = arith.constant 0 : index
    %c0_2 = arith.constant 0 : index
    %1 = vector.load %arg2[%c0_1, %c0_2] : memref<32x128xbf16, #tpu.memory_space<vmem>>, vector<32x128xbf16>
    %2 = arith.truncf %0 : vector<16x32xf32> to vector<16x32xbf16>
    %3 = arith.extf %2 : vector<16x32xbf16> to vector<16x32xf32>
    %4 = arith.subf %0, %3 : vector<16x32xf32>
    %5 = arith.truncf %4 : vector<16x32xf32> to vector<16x32xbf16>
    %6 = arith.extf %5 : vector<16x32xbf16> to vector<16x32xf32>
    %7 = arith.subf %4, %6 : vector<16x32xf32>
    %8 = arith.truncf %7 : vector<16x32xf32> to vector<16x32xbf16>
    %cst = arith.constant dense<0.000000e+00> : vector<16x128xf32>
    %9 = tpu.matmul %2, %1, %cst {dimension_numbers = #tpu.dot_dimension_numbers<[1], [0], [0], [1], [0, 0, 1, 1], [], []>} : vector<16x32xbf16>, vector<32x128xbf16>, vector<16x128xf32> -> vector<16x128xf32>
    %cst_3 = arith.constant dense<0.000000e+00> : vector<16x128xf32>
    %10 = tpu.matmul %5, %1, %cst_3 {dimension_numbers = #tpu.dot_dimension_numbers<[1], [0], [0], [1], [0, 0, 1, 1], [], []>} : vector<16x32xbf16>, vector<32x128xbf16>, vector<16x128xf32> -> vector<16x128xf32>
    %11 = arith.addf %9, %10 : vector<16x128xf32>
    %cst_4 = arith.constant dense<0.000000e+00> : vector<16x128xf32>
    %12 = tpu.matmul %8, %1, %cst_4 {dimension_numbers = #tpu.dot_dimension_numbers<[1], [0], [0], [1], [0, 0, 1, 1], [], []>} : vector<16x32xbf16>, vector<32x128xbf16>, vector<16x128xf32> -> vector<16x128xf32>
    %13 = arith.addf %11, %12 : vector<16x128xf32>
    %c0_5 = arith.constant 0 : index
    %c0_6 = arith.constant 0 : index
    %14 = vector.load %arg3[%c0_5, %c0_6] : memref<16x128xf32, #tpu.memory_space<vmem>>, vector<16x128xf32>
    tpu.vector_store %arg3[%c0_5, %c0_6], %13 {strides = array<i32>} : memref<16x128xf32, #tpu.memory_space<vmem>>, vector<16x128xf32>,
    return
  }
  func.func @transform_0(%arg0: i32) -> (i32, i32) {
    %c0_i32 = arith.constant 0 : i32
    %c0_i32_0 = arith.constant 0 : i32
    return %arg0, %c0_i32 : i32, i32
  }
  func.func @transform_1(%arg0: i32) -> (i32, i32) {
    %c0_i32 = arith.constant 0 : i32
    %c0_i32_0 = arith.constant 0 : i32
    %c0_i32_1 = arith.constant 0 : i32
    return %c0_i32, %c0_i32_0 : i32, i32
  }
  func.func @transform_2(%arg0: i32) -> (i32, i32) {
    %c0_i32 = arith.constant 0 : i32
    %c0_i32_0 = arith.constant 0 : i32
    return %arg0, %c0_i32 : i32, i32
  }
}

</mosaic_0001>

<bundles_post_ra>
// kernel: tpu_custom_call.1
= control target key start
LH: loop header
LB: loop body
LE: loop exit
PB: predicated region body
PF: predicated region fallthrough
CT: control target
= control target key end

     0   :  { %7 = vsyncpa [#allocation3], 0  ;;  %s679_s0 = inlined_call_operand.vmem [shape: f32[64,32], index: 0, kind: input, shape index: {}]   ;;  %s680_s1 = inlined_call_operand.vmem [shape: bf16[32,128], index: 1, kind: input, shape index: {}]   ;;  %s681_s2 = inlined_call_operand.hbm [shape: f32[64,128], index: 2, kind: output, shape index: {}]  }
   0x1   :  { %9 = vsyncpa [#allocation3 + $0x1], 0  ;;  %s566_s9 = smov 0   ;;  %s568_s10 = smov 0  }
   0x2   :  { %s570_s11 = smov 0   ;;  %s572_s12 = smov 0  }
   0x3 LB: > { %s587_s13 = sadd.s32 4294967295, %s544_s12   ;;  %s388_s14 = sadd.s32 4294967294, %s544_s12   ;;  %s544_s12 = sphi %s572_s12, %s687_s12   ;;  %s540_s11 = sphi %s570_s11, %s686_s11   ;;  %s536_s10 = sphi %s568_s10, %s685_s10   ;;  %s532_s9 = sphi %s566_s9, %s684_s9  }
   0x4   : > { %s591_s15 = sadd.s32 1, %s544_s12   ;;  %s69_s16 = sadd.s32 1, %s540_s11 }
   0x5   : > { %s66_s17 = ssub.s32 %s544_s12, %s591_s15  ;;  %p79_p0 = scmp.ne.s32.totalorder %s540_s11, %s536_s10 }
   0x6   : > { %p67_p1 = scmp.eq.s32.totalorder %s66_s17, 0  ;;  %p80_p2 = scmp.eq.s32.totalorder %s587_s13, 3 }
   0x7   : > { %p85_p3 = scmp.ne.s32.totalorder %s536_s10, %s532_s9  ;;  %p86_p4 = scmp.eq.s32.totalorder %s388_s14, 3 }
   0x8   : > { %s602_s18 = scalar_select %p67_p1, %s540_s11, %s69_s16  }
   0x9   : > { %p604_p5 = por %p80_p2, %p79_p0  ;;  %p608_p6 = por %p86_p4, %p85_p3 }
   0xa   : > { %p391_p7 = scmp.ge.s32.totalorder %s544_s12, 1  ;;  %p116_p8 = scmp.lt.s32.totalorder %s544_s12, 5 }
   0xc   : > { %p117_p9 = pnand %p391_p7, %p116_p8 }
   0xd   : > { %s393_s25 = sshll.u32 (!%p117_p9), %s587_s13, 1  ;;  %s135_s30 = sand.u32 (!%p117_p9), 1, %s536_s10  }
   0xe   : > { %120 = sbr.rel (%p117_p9) target bundleno = 252 (0xfc), region = 28  ;;  %p139_p10 = scmp.lt.s32.totalorder (!%p117_p9), %s393_s25, 7 }
   0xf   : > { %s392_s3 = sshll.u32 (!%p117_p9), %s135_s30, 4  ;;  %s405_s6 = sshll.u32 (!%p117_p9), %s587_s13, 8 }
  0x10   : > { %s137_s4 = scalar_lea.vmem (!%p117_p9), [#allocation2], %s392_s3  ;;  %s637_s14 = scalar_lea.hbm (!%p117_p9), %s681_s2, %s405_s6 }
  0x11   : > { %s326_s5 = sshll.u32 (!%p117_p9), %s137_s4, 4  ;;  %s639_s16 = scalar_lea.sflag (!%p117_p9), [#allocation3], %s135_s30  ;;  %s632_s5 = int_to_ptr.vmem [resolvable:$true] %s326_s5 }
  0x12   : > { %s484_s13 = scalar_lea.vmem (!%p117_p9), %s632_s5, 256  ;;  %s548_s17 = smov (!%p117_p9), [#allocation2]  }
  0x13   : > { %v482_v0 = vld [vmem:[%s680_s1 + $0x8] sm:$0xff]   ;;  %v546_v1 = vmov 0.0   ;;  %v483_v2 = vld [vmem:[%s680_s1] sm:$0xff]   ;;  %vm547_vm0 = vmmov 0   ;;  %s689_s25 = smov (!%p139_p10, %s393_s25), 7  ;;  %vm175_vm1 = vcmask 261120   ;;  %p485_p11 = scmp.ne.s32.totalorder %s632_s5, %s484_s13 }
  0x14   : > { %415 = vmatprep.subr.bf16.mxu0 %v546_v1  ;;  %423 = vmatprep.subr.bf16.mxu1 %v546_v1  ;;  %s394_s26 = sshll.u32 %s689_s25, 3  ;;  %s488_s21 = sshll.u32 %s548_s17, 4  ;;  %s489_s21 = int_to_ptr.vmem [resolvable:$false] %s488_s21 }
  0x15   : > { %416 = vmatpush3.bf16.msra.mxu0 %v482_v0  ;;  %424 = vmatpush3.bf16.msra.mxu1 %v482_v0  ;;  %s142_s29 = scalar_lea.vmem %s679_s0, %s394_s26  ;;  %p486_p12 = pnand %p485_p11, %p604_p5 }
  0x16   : > { %417 = vmatprep.subr.bf16.mxu0 %v546_v1  ;;  %425 = vmatprep.subr.bf16.mxu1 %v546_v1  ;;  %v146_v3 = vld [vmem:[%s142_s29] sm:$0xff]  ;;  %v147_v4 = vld [vmem:[%s142_s29 + $0x8] sm:$0xff]  ;;  %s490_s22 = scalar_lea.vmem %s489_s21, 512  ;;  %p491_p0 = scmp.lt.s32.totalorder %s632_s5, %s489_s21 }
  0x17   : > { %419 = vmatprep.mubr.msk.bf16.mxu0 %vm547_vm0, %v546_v1  ;;  %427 = vmatprep.mubr.msk.bf16.mxu1 %vm547_vm0, %v546_v1  ;;  %v152_v5 = vpack.c.bf16 %v147_v4, %v146_v3  ;;  %p487_p13 = pneg %p486_p12  ;;  %p492_p1 = scmp.lt.s32.totalorder %s490_s22, %s484_s13 }
  0x19   : > { %418 = vmatpush3.bf16.msra.mxu0 %v483_v2  ;;  %426 = vmatpush3.bf16.msra.mxu1 %v483_v2  ;;  %v153_v6 = vunpack.c.l.bf16 %v152_v5  ;;  %v154_v7 = vunpack.c.h.bf16 %v152_v5  ;;  %p493_p2 = por %p492_p1, %p491_p0 }
  0x1a   : > { %431 = vmatprep.subr.bf16.mxu0 %v546_v1 }
  0x1b   : > { %v155_v8 = vsub.f32 %v146_v3, %v153_v6  ;;  %v156_v9 = vsub.f32 %v147_v4, %v154_v7  ;;  %p494_p3 = pnand %p493_p2, %p487_p13 }
  0x1c   : > { %428 = vmatmul.mubr.msk.bf16.vlgmr.msra.gmra.mxu1 %vm175_vm1, %v152_v5 }
  0x1d   : > { %v157_v10 = vpack.c.bf16 %v156_v9, %v155_v8 }
  0x1f   : > { %v158_v11 = vunpack.c.l.bf16 %v157_v10  ;;  %v159_v12 = vunpack.c.h.bf16 %v157_v10  ;;  %420 = vmatmul.mubr.msk.bf16.vlgmr.msra.gmra.mxu0 %vm175_vm1, %v157_v10 }
  0x20   : > { %432 = vmatpush3.bf16.msra.mxu0 %v482_v0  ;;  %435 = vmatprep.mubr.msk.bf16.mxu0 %vm547_vm0, %v546_v1 }
  0x21   : > { %v160_v13 = vsub.f32 %v155_v8, %v158_v11  ;;  %v161_v14 = vsub.f32 %v156_v9, %v159_v12  ;;  %433 = vmatprep.subr.bf16.mxu0 %v546_v1 }
  0x23   : > { %v162_v15 = vpack.c.bf16 %v161_v14, %v160_v13 }
  0x24   : > { %434 = vmatpush3.bf16.msra.mxu0 %v483_v2 }
  0x27   : > { %436 = vmatmul.mubr.msk.bf16.vlgmr.msra.gmra.mxu0 %vm175_vm1, %v162_v15 }
  0xdc   : > { %v257_v16 = vpop.f32.mrf.mxu1 }
  0xde   : > { %v429_v17 = vpop.f32.mrf.mxu1 }
  0xdf   : > { %v213_v19 = vpop.f32.mrf.mxu0 }
  0xe0   : > { %v260_v18 = vpop.f32.mrf.mxu1  ;;  %v258_v24 = vadd.f32 %v257_v16, %v213_v19 }
  0xe1   : > { %v421_v21 = vpop.f32.mrf.mxu0 }
  0xe2   : > { %v430_v20 = vpop.f32.mrf.mxu1 }
  0xe3   : > { %v216_v22 = vpop.f32.mrf.mxu0 }
  0xe4   : > { %v261_v28 = vadd.f32 %v260_v18, %v216_v22 }
  0xe5   : > { %v422_v23 = vpop.f32.mrf.mxu0 }
  0xe7   : > { %v301_v25 = vpop.f32.mrf.mxu0 }
  0xe8   : > { %v308_v26 = vadd.f32 %v301_v25, %v258_v24 }
  0xe9   : > { %v437_v27 = vpop.f32.mrf.mxu0 }
  0xea   : > { %310 = vst [vmem:[%s137_s4] sm:$0xff] %v308_v26 }
  0xeb   : > { %v304_v29 = vpop.f32.mrf.mxu0 }
  0xec   : > { %v309_v30 = vadd.f32 %v304_v29, %v261_v28 }
  0xed   : > { %v438_v31 = vpop.f32.mrf.mxu0 }
  0xee   : > { %311 = vst [vmem:[%s137_s4 + $0x8] sm:$0xff] %v309_v30 }
  0xef   : > { %497 = shalt.err (!%p494_p3)
}
  0xf0   : > { %s498_s23 = scalar_lea.hbm %s637_s14, 256  ;;  %s502_s26 = scalar_lea.hbm %s681_s2, 1024 }
  0xf1   : > { %p499_p4 = scmp.ne.s32.totalorder %s637_s14, %s498_s23  ;;  %p503_p9 = scmp.lt.s32.totalorder %s637_s14, %s681_s2 }
  0xf2   : > { %p504_p10 = scmp.lt.s32.totalorder %s502_s26, %s498_s23 }
  0xf3   : > { %p500_p7 = pnand %p499_p4, %p604_p5 }
  0xf4   : > { %p505_p11 = por %p504_p10, %p503_p9 }
  0xf5   : > { %p501_p8 = pneg %p500_p7 }
  0xf7   : > { %p506_p12 = pnand %p505_p11, %p501_p8 }
  0xf9   : > { %509 = shalt.err (!%p506_p12)
}
  0xfa   : > { %s549_s29 = smov 128   ;;  %s550_s30 = smov 8  }
  0xfb   : > { %439 = dma.vmem_to_hbm [thread:$0]  (%p604_p5), %s632_s5, 256, %s637_s14, %s639_s16, %s549_s29, %s549_s29, %s550_s30  }
  0xfc PF: > { %p445_p13 = scmp.ge.s32.totalorder %s544_s12, 2  ;;  %s341_s3 = sand.u32 1, %s532_s9  }
  0xfd   : > { %s342_s4 = scalar_lea.sflag [#allocation3], %s341_s3 }
  0xfe   : > { %p442_p0 = pnand %p445_p13, %p608_p6 }
 0x100   : > { %p443_p1 = pneg %p442_p0 }
 0x102   : > { %527 = dma.done.wait (%p443_p1), %s342_s4, 256  }
 0x103   : > { %529 = vsyncadd (%p443_p1), %s342_s4, 4294967040  ;;  %p12_p2 = scmp.ge.s32.totalorder %s591_s15, 6   ;;  %s684_s9 = smov %s536_s10 }
 0x104   : > { %s685_s10 = smov %s540_s11  ;;  %s686_s11 = smov %s602_s18 }
 0x105   : > { %s687_s12 = smov %s591_s15  ;;  %14 = sbr.rel (!%p12_p2) target bundleno = 3 (0x3), region = 63 }
 0x10a   :  { %347 = vsyncpa [#allocation3], 1 }
 0x10b   :  { %349 = vsyncpa [#allocation3 + $0x1], 1 }

</bundles_post_ra>
